<compile_context>
chip_gen: v5e
topology: v5e:2x2
jax: 0.10.0
libtpu: 0.0.40
codegen_flags: <defaults>
</compile_context>

<pallas_src>
import functools

import numpy as np
import jax
import jax.numpy as jnp
from jax.experimental import pallas as pl
from jax.experimental.pallas import tpu as pltpu


def _gemm_bn_relu_kernel(x_ref, w_ref, shift_ref, out_ref, acc_ref, *, apply_relu):
    """One (M-tile, Cout-tile, K-tile) grid step of the im2col GEMM.

    x_ref    : (TM, TK)      im2col patch tile (compute dtype)
    w_ref    : (TK, TCout)   BN-scale-folded weight tile (compute dtype)
    shift_ref: (1, TCout)    folded BN shift (f32)
    out_ref  : (TM, TCout)   flat, lane-dense output tile
    acc_ref  : (TM, TCout)   f32 VMEM accumulator (persists across the K axis)
    """
    k = pl.program_id(2)

    @pl.when(k == 0)
    def _():
        acc_ref[...] = jnp.zeros_like(acc_ref)

    acc_ref[...] += jnp.dot(x_ref[...], w_ref[...],
                            preferred_element_type=jnp.float32)

    @pl.when(k == pl.num_programs(2) - 1)
    def _():
        y = acc_ref[...] + shift_ref[...]          # BN shift (scale already in w)
        if apply_relu:
            y = jnp.maximum(y, 0.0)
        out_ref[...] = y.astype(out_ref.dtype)     # full-lane vst, no reshape


def basic_conv(x_nchw, weight_oihw, gamma, beta, running_mean, running_var,
               *, padding=1, eps=1e-5, bn=True, relu=True, compute_dtype=None):
    """BasicConv forward. x_nchw: (N, Cin, H, W), weight_oihw: (Cout, Cin, KH, KW).

    stride=1, dilation=1, groups=1, bias=False (the panini.py BasicConv config).
    `compute_dtype` (e.g. jnp.bfloat16) sets the MXU operand dtype; accumulation
    is always f32 and the output keeps the input dtype.  Note: in the bf16 path
    the BN scale is folded into the weights *before* the bf16 cast, so rounding
    differs slightly from PyTorch's conv-then-BN order.
    """
    N, Cin, H, W = x_nchw.shape
    Cout, Cin_w, KH, KW = weight_oihw.shape
    assert Cin == Cin_w, "groups != 1 not supported"

    out_dtype = x_nchw.dtype
    if compute_dtype is None:
        compute_dtype = x_nchw.dtype

    # ----- BN folding (in f32) -----
    if bn:
        scale = (gamma / jnp.sqrt(running_var + eps)).astype(jnp.float32)
        shift = (beta - running_mean * scale).astype(jnp.float32)
    else:
        scale = jnp.ones((Cout,), jnp.float32)
        shift = jnp.zeros((Cout,), jnp.float32)

    # Fold BN scale into conv weights; im2col-major K layout (KH, KW, Cin) -> Kdim.
    w_hwio = jnp.transpose(weight_oihw.astype(jnp.float32), (2, 3, 1, 0))  # (KH,KW,Cin,Cout)
    w_hwio = w_hwio * scale[None, None, None, :]

    # Pad Cout to a lane-dense multiple of 128.
    LANE = 128
    Cout_p = ((Cout + LANE - 1) // LANE) * LANE
    pad_c = Cout_p - Cout
    if pad_c:
        w_hwio = jnp.pad(w_hwio, ((0, 0), (0, 0), (0, 0), (0, pad_c)))
        shift = jnp.pad(shift, (0, pad_c))
    Kdim = KH * KW * Cin
    w2 = w_hwio.reshape(Kdim, Cout_p).astype(compute_dtype)
    shift2 = shift.reshape(1, Cout_p)                                     # stays f32

    # ----- wrapper-side im2col (NCHW -> NHWC, zero pad, patch matrix) -----
    x = jnp.transpose(x_nchw, (0, 2, 3, 1)).astype(compute_dtype)         # NHWC
    xpad = jnp.pad(x, ((0, 0), (padding, padding), (padding, padding), (0, 0)))
    Hp, Wp = H + 2 * padding, W + 2 * padding
    Ho, Wo = Hp - KH + 1, Wp - KW + 1                                     # stride=1, dil=1

    cols = [xpad[:, kh:kh + Ho, kw:kw + Wo, :]                            # (N,Ho,Wo,Cin)
            for kh in range(KH) for kw in range(KW)]
    patches = jnp.concatenate(cols, axis=-1)                              # (N,Ho,Wo,Kdim)
    M_total = N * Ho * Wo
    patches = patches.reshape(M_total, Kdim)

    # ----- tiling -----
    # Cout tile: 256 feeds the 256-wide v6e/v7x MXU when Cout allows; 128 otherwise
    # (and 128 is what v5e's MXU wants anyway).
    TCout = 256 if Cout_p % 256 == 0 else 128
    n_ct = Cout_p // TCout

    # M tile: ~256 rows (cdiv-based, pad the last partial tile instead of searching
    # for divisors).  Clamp for tiny problems, keep sublane (8) alignment.
    TM = 256
    if M_total < TM:
        TM = ((M_total + 7) // 8) * 8
    n_mt = (M_total + TM - 1) // TM
    M_pad = n_mt * TM
    if M_pad > M_total:
        patches = jnp.pad(patches, ((0, M_pad - M_total), (0, 0)))

    # K tile: single pass for moderate K; chunked reduction grid axis for large K.
    if Kdim <= 2048:
        TK, n_kt, K_pad = Kdim, 1, Kdim
    else:
        TK = 512
        n_kt = (Kdim + TK - 1) // TK
        K_pad = n_kt * TK
        patches = jnp.pad(patches, ((0, 0), (0, K_pad - Kdim)))
        w2 = jnp.pad(w2, ((0, K_pad - Kdim), (0, 0)))

    # ----- VMEM budget (double-buffered blocks + f32 accumulator) & cost -----
    cbytes = np.dtype(compute_dtype).itemsize
    obytes = np.dtype(out_dtype).itemsize
    block_bytes = (2 * TM * TK * cbytes          # patch tile, double buffered
                   + 2 * TK * TCout * cbytes     # weight tile, double buffered
                   + 2 * 8 * TCout * 4           # shift tile (sublane-padded)
                   + 2 * TM * TCout * obytes     # output tile, double buffered
                   + TM * TCout * 4)             # f32 accumulator scratch
    vmem_limit = int(min(48 * 2**20, max(16 * 2**20, 2 * block_bytes)))

    cost = pl.CostEstimate(
        flops=2 * M_total * Kdim * Cout_p,
        transcendentals=0,
        bytes_accessed=int(M_pad * K_pad * cbytes
                           + K_pad * Cout_p * cbytes
                           + Cout_p * 4
                           + M_pad * Cout_p * obytes),
    )

    kernel = functools.partial(_gemm_bn_relu_kernel, apply_relu=relu)

    out_flat = pl.pallas_call(
        kernel,
        out_shape=jax.ShapeDtypeStruct((M_pad, Cout_p), out_dtype),
        grid_spec=pltpu.PrefetchScalarGridSpec(
            num_scalar_prefetch=0,
            grid=(n_mt, n_ct, n_kt),                            # reduction axis last
            in_specs=[
                pl.BlockSpec((TM, TK), lambda i, j, k: (i, k)),
                pl.BlockSpec((TK, TCout), lambda i, j, k: (k, j)),
                pl.BlockSpec((1, TCout), lambda i, j, k: (0, j)),
            ],
            out_specs=pl.BlockSpec((TM, TCout), lambda i, j, k: (i, j)),
            scratch_shapes=[pltpu.VMEM((TM, TCout), jnp.float32)],
        ),
        compiler_params=pltpu.CompilerParams(
            dimension_semantics=("parallel", "parallel", "arbitrary"),
            vmem_limit_bytes=vmem_limit),
        cost_estimate=cost,
    )(patches, w2, shift2)

    out = out_flat[:M_total, :Cout].reshape(N, Ho, Wo, Cout)    # drop pad rows / lanes
    return jnp.transpose(out, (0, 3, 1, 2))                     # NHWC -> NCHW


def _reference(x_nchw, weight_oihw, gamma, beta, running_mean, running_var,
               *, padding=1, eps=1e-5, bn=True, relu=True):
    y = jax.lax.conv_general_dilated(
        x_nchw, weight_oihw,
        window_strides=(1, 1),
        padding=[(padding, padding), (padding, padding)],
        dimension_numbers=("NCHW", "OIHW", "NCHW"))
    if bn:
        scale = gamma / jnp.sqrt(running_var + eps)
        shift = beta - running_mean * scale
        y = y * scale[None, :, None, None] + shift[None, :, None, None]
    if relu:
        y = jnp.maximum(y, 0.0)
    return y


if __name__ == "__main__":
    # BasicConv(in_planes=4, out_planes=8, kernel_size=3, padding=1) — default bn/relu on.
    N, Cin, H, W = 2, 4, 16, 16
    Cout, KH, KW = 8, 3, 3

    key = jax.random.PRNGKey(0)
    kx, kw = jax.random.split(key)
    x = jax.random.normal(kx, (N, Cin, H, W), dtype=jnp.float32)
    weight = 0.1 * jax.random.normal(kw, (Cout, Cin, KH, KW), dtype=jnp.float32)

    # Deterministic BN parameters (eval-mode running stats).
    gamma = 1.0 + 0.1 * jnp.arange(Cout, dtype=jnp.float32)
    beta = 0.05 * jnp.arange(Cout, dtype=jnp.float32)
    running_mean = 0.02 * jnp.arange(Cout, dtype=jnp.float32)
    running_var = 1.0 + 0.01 * jnp.arange(Cout, dtype=jnp.float32)

    ref = _reference(x, weight, gamma, beta, running_mean, running_var,
                     padding=1, bn=True, relu=True)

    # f32 path (exact semantics of the PyTorch module in eval mode).
    out = basic_conv(x, weight, gamma, beta, running_mean, running_var,
                     padding=1, bn=True, relu=True)
    out = jax.block_until_ready(out)
    assert out.shape == (N, Cout, H, W)
    assert jnp.allclose(out, ref, atol=1e-4, rtol=1e-4)

    # bf16 operand path (f32 MXU accumulation) — halves HBM/VMEM traffic.
    out_bf16 = basic_conv(x, weight, gamma, beta, running_mean, running_var,
                          padding=1, bn=True, relu=True, compute_dtype=jnp.bfloat16)
    out_bf16 = jax.block_until_ready(out_bf16)
    assert jnp.allclose(out_bf16, ref, atol=5e-2, rtol=5e-2)

    print("KERNEL_OK")
</pallas_src>

<mosaic_0001>
module attributes {stable_mosaic.version = 11 : i64} {
  func.func @_gemm_bn_relu_kernel(%arg0: i32, %arg1: i32, %arg2: i32, %arg3: memref<256x36xf32, #tpu.memory_space<vmem>>, %arg4: memref<36x128xf32, #tpu.memory_space<vmem>>, %arg5: memref<1x128xf32, #tpu.memory_space<vmem>>, %arg6: memref<256x128xf32, #tpu.memory_space<vmem>>, %arg7: memref<256x128xf32, #tpu.memory_space<vmem>>) attributes {dimension_semantics = [#tpu.dimension_semantics<parallel>, #tpu.dimension_semantics<parallel>, #tpu.dimension_semantics<arbitrary>], iteration_bounds = array<i64: 2, 1, 1>, scalar_prefetch = 0 : i64, scratch_operands = 1 : i64, tpu.core_type = #tpu.core_type<tc>, window_params = [{transform_indices = @transform_0, window_bounds = array<i64: 256, 36>}, {transform_indices = @transform_1, window_bounds = array<i64: 36, 128>}, {transform_indices = @transform_2, window_bounds = array<i64: 1, 128>}, {transform_indices = @transform_3, window_bounds = array<i64: 256, 128>}]} {
    %c0_i32 = arith.constant 0 : i32
    %0 = arith.cmpi eq, %arg2, %c0_i32 : i32
    %1 = arith.extui %0 : i1 to i32
    %c0_i32_0 = arith.constant 0 : i32
    %2 = arith.cmpi ne, %1, %c0_i32_0 : i32
    scf.if %2 {
      %cst_10 = arith.constant 0.000000e+00 : f32
      %12 = vector.broadcast %cst_10 : f32 to vector<256x128xf32>
      %c0_11 = arith.constant 0 : index
      %c0_12 = arith.constant 0 : index
      %13 = vector.load %arg7[%c0_11, %c0_12] : memref<256x128xf32, #tpu.memory_space<vmem>>, vector<256x128xf32>
      tpu.vector_store %arg7[%c0_11, %c0_12], %12 {strides = array<i32>} : memref<256x128xf32, #tpu.memory_space<vmem>>, vector<256x128xf32>,
    } else {
    }
    %c0 = arith.constant 0 : index
    %c0_1 = arith.constant 0 : index
    %3 = vector.load %arg7[%c0, %c0_1] : memref<256x128xf32, #tpu.memory_space<vmem>>, vector<256x128xf32>
    %c0_2 = arith.constant 0 : index
    %c0_3 = arith.constant 0 : index
    %4 = vector.load %arg3[%c0_2, %c0_3] : memref<256x36xf32, #tpu.memory_space<vmem>>, vector<256x36xf32>
    %c0_4 = arith.constant 0 : index
    %c0_5 = arith.constant 0 : index
    %5 = vector.load %arg4[%c0_4, %c0_5] : memref<36x128xf32, #tpu.memory_space<vmem>>, vector<36x128xf32>
    %cst = arith.constant dense<0.000000e+00> : vector<256x128xf32>
    %6 = tpu.matmul %4, %5, %cst {dimension_numbers = #tpu.dot_dimension_numbers<[1], [0], [0], [1], [0, 0, 1, 1], [], []>} : vector<256x36xf32>, vector<36x128xf32>, vector<256x128xf32> -> vector<256x128xf32>
    %7 = arith.addf %3, %6 : vector<256x128xf32>
    %c0_6 = arith.constant 0 : index
    %c0_7 = arith.constant 0 : index
    %8 = vector.load %arg7[%c0_6, %c0_7] : memref<256x128xf32, #tpu.memory_space<vmem>>, vector<256x128xf32>
    tpu.vector_store %arg7[%c0_6, %c0_7], %7 {strides = array<i32>} : memref<256x128xf32, #tpu.memory_space<vmem>>, vector<256x128xf32>,
    %c0_i32_8 = arith.constant 0 : i32
    %9 = arith.cmpi eq, %arg2, %c0_i32_8 : i32
    %10 = arith.extui %9 : i1 to i32
    %c0_i32_9 = arith.constant 0 : i32
    %11 = arith.cmpi ne, %10, %c0_i32_9 : i32
    scf.if %11 {
      %c0_10 = arith.constant 0 : index
      %c0_11 = arith.constant 0 : index
      %12 = vector.load %arg7[%c0_10, %c0_11] : memref<256x128xf32, #tpu.memory_space<vmem>>, vector<256x128xf32>
      %c0_12 = arith.constant 0 : index
      %c0_13 = arith.constant 0 : index
      %13 = vector.load %arg5[%c0_12, %c0_13] : memref<1x128xf32, #tpu.memory_space<vmem>>, vector<1x128xf32>
      %14 = vector.broadcast %13 : vector<1x128xf32> to vector<256x128xf32>
      %15 = arith.addf %12, %14 : vector<256x128xf32>
      %cst_14 = arith.constant 0.000000e+00 : f32
      %16 = vector.broadcast %cst_14 : f32 to vector<256x128xf32>
      %17 = arith.maximumf %15, %16 : vector<256x128xf32>
      %c0_15 = arith.constant 0 : index
      %c0_16 = arith.constant 0 : index
      %18 = vector.load %arg6[%c0_15, %c0_16] : memref<256x128xf32, #tpu.memory_space<vmem>>, vector<256x128xf32>
      tpu.vector_store %arg6[%c0_15, %c0_16], %17 {strides = array<i32>} : memref<256x128xf32, #tpu.memory_space<vmem>>, vector<256x128xf32>,
    } else {
    }
    return
  }
  func.func @transform_0(%arg0: i32, %arg1: i32, %arg2: i32) -> (i32, i32) {
    %c0_i32 = arith.constant 0 : i32
    return %arg0, %arg2 : i32, i32
  }
  func.func @transform_1(%arg0: i32, %arg1: i32, %arg2: i32) -> (i32, i32) {
    %c0_i32 = arith.constant 0 : i32
    return %arg2, %arg1 : i32, i32
  }
  func.func @transform_2(%arg0: i32, %arg1: i32, %arg2: i32) -> (i32, i32) {
    %c0_i32 = arith.constant 0 : i32
    %c0_i32_0 = arith.constant 0 : i32
    return %c0_i32, %arg1 : i32, i32
  }
  func.func @transform_3(%arg0: i32, %arg1: i32, %arg2: i32) -> (i32, i32) {
    %c0_i32 = arith.constant 0 : i32
    return %arg0, %arg1 : i32, i32
  }
}

</mosaic_0001>

<bundles_post_ra>
// kernel: tpu_custom_call.1
= control target key start
LH: loop header
LB: loop body
LE: loop exit
PB: predicated region body
PF: predicated region fallthrough
CT: control target
= control target key end

     0   :  { %8 = vsyncpa [#allocation4], 0  ;;  %s1371_s0 = inlined_call_operand.vmem [shape: f32[512,36], index: 0, kind: input, shape index: {}]   ;;  %s1372_s1 = inlined_call_operand.vmem [shape: f32[36,128], index: 1, kind: input, shape index: {}]   ;;  %s1373_s2 = inlined_call_operand.vmem [shape: f32[1,128], index: 2, kind: input, shape index: {}]   ;;  %s1374_s3 = inlined_call_operand.hbm [shape: f32[512,128], index: 3, kind: output, shape index: {}]  }
   0x1   :  { %10 = vsyncpa [#allocation4 + $0x1], 0  ;;  %s1118_s12 = smov 0   ;;  %s1120_s13 = smov 0  }
   0x2   :  { %s1122_s14 = smov 0   ;;  %s1124_s15 = smov 0  }
   0x3   :  { %s1126_s16 = smov 0   ;;  %s1128_s17 = smov 0  }
   0x4 LB: > { %s894_s18 = sadd.s32 4294967295, %s1094_s17   ;;  %s895_s19 = sadd.s32 4294967294, %s1094_s17   ;;  %s1094_s17 = sphi %s1128_s17, %s16_s17   ;;  %s1090_s16 = sphi %s1126_s16, %s1381_s16   ;;  %s1086_s15 = sphi %s1124_s15, %s1380_s15   ;;  %s1082_s14 = sphi %s1122_s14, %s1379_s14   ;;  %s1078_s13 = sphi %s1120_s13, %s1378_s13   ;;  %s1074_s12 = sphi %s1118_s12, %s1377_s12  }
   0x5   : > { %s35_s20 = sadd.s32 1, %s1090_s16  ;;  %s126_s21 = sadd.s32 1, %s1082_s14 }
   0x6   : > { %p37_p0 = scmp.ge.s32.totalorder %s35_s20, 2  ;;  %p136_p1 = scmp.ne.s32.totalorder %s1082_s14, %s1078_s13 }
   0x7   : > { %p137_p2 = scmp.eq.s32.totalorder %s894_s18, 1  ;;  %p142_p3 = scmp.ne.s32.totalorder %s1078_s13, %s1074_s12 }
   0x8   : > { %s1383_s20 = smov (%p37_p0, %s35_s20), 0  ;;  %p143_p5 = scmp.eq.s32.totalorder %s895_s19, 1 }
   0x9   : > { %p1158_p4 = por %p137_p2, %p136_p1  ;;  %s121_s23 = ssub.s32 %s1090_s16, %s1383_s20 }
   0xa   : > { %p900_p6 = scmp.ge.s32.totalorder %s1094_s17, 1  ;;  %p124_p7 = scmp.eq.s32.totalorder %s121_s23, 0 }
   0xb   : > { %p1165_p8 = por %p143_p5, %p142_p3  ;;  %p191_p9 = scmp.lt.s32.totalorder %s1094_s17, 3 }
   0xc   : > { %s1171_s25 = scalar_select %p124_p7, %s1082_s14, %s126_s21  }
   0xd   : > { %p192_p10 = pnand %p900_p6, %p191_p9 }
   0xe   : > { %s902_s30 = sshll.u32 (!%p192_p10), %s1086_s15, 5  ;;  %s226_s21 = sand.u32 (!%p192_p10), 1, %s1078_s13  }
   0xf   : > { %195 = sbr.rel (%p192_p10) target bundleno = 227 (0xe3), region = 32  ;;  %p230_p11 = scmp.lt.s32.totalorder (!%p192_p10), %s902_s30, 63 }
  0x10   : > { %s901_s27 = sshll.u32 (!%p192_p10), %s226_s21, 8  ;;  %s942_s29 = sshll.u32 (!%p192_p10), %s1086_s15, 8 }
  0x11   : > { %s1268_s28 = scalar_lea.vmem (!%p192_p10), [#allocation3], %s901_s27  ;;  %s782_s5 = scalar_lea.hbm (!%p192_p10), %s1374_s3, %s942_s29 }
  0x12   : > { %s783_s15 = sshll.u32 (!%p192_p10), %s1268_s28, 4  ;;  %s785_s6 = sshll.u32 (!%p192_p10), %s782_s5, 4  ;;  %s784_s15 = int_to_ptr.vmem [resolvable:$true] %s783_s15  ;;  %s786_s6 = int_to_ptr.hbm [resolvable:$true] %s785_s6 }
  0x13   : > { %s770_s7 = scalar_lea.sflag (!%p192_p10), [#allocation4], %s226_s21  ;;  %s1036_s18 = scalar_lea.hbm (!%p192_p10), %s1374_s3, 512 }
  0x14   : > { %v355_v0 = vld [vmem:[%s1372_s1 + $0x20] sm:$0xf]  ;;  %vm453_vm0 = vcmask 1043456   ;;  %v354_v1 = vld [vmem:[%s1372_s1 + $0x18] sm:$0xff]  ;;  %v353_v2 = vld [vmem:[%s1372_s1 + $0x10] sm:$0xff]  ;;  %s1385_s30 = smov (!%p230_p11, %s902_s30), 63 }
  0x15   : > { %944 = vmatpush.msk.msra.mxu2 %vm453_vm0, %v355_v0  ;;  %945 = vmatpush.msk.msra.mxu3 %vm453_vm0, %v355_v0  ;;  %v352_v3 = vld [vmem:[%s1372_s1 + $0x8] sm:$0xff]  ;;  %s903_s8 = sshll.u32 %s1385_s30, 3  ;;  %v351_v4 = vld [vmem:[%s1372_s1] sm:$0xff]  ;;  %vm356_vm1 = vcmask 293888  }
  0x16   : > { %904 = vmatpush.msk.msra.mxu0 %vm453_vm0, %v355_v0  ;;  %943 = vmatpush.msk.msra.mxu1 %vm453_vm0, %v355_v0  ;;  %s1192_s19 = scalar_lea.vmem %s1371_s0, %s903_s8  ;;  %v1262_v37 = vld [vmem:[%s1373_s2] ss:$0 sm:$0xff]  ;;  %s1030_s8 = sshra.s32 %s786_s6, 4  ;;  %s1031_s8 = int_to_ptr.hbm [resolvable:$true] %s1030_s8 }
  0x17   : > { %947 = vmatpush.msra.mxu2 %v354_v1  ;;  %948 = vmatpush.msra.mxu3 %v354_v1  ;;  %v335_v5 = vld [vmem:[%s1192_s19 + $0x80] sm:$0xff]  ;;  %v336_v9 = vld [vmem:[%s1192_s19 + $0x88] sm:$0xff]  ;;  %v337_v13 = vld [vmem:[%s1192_s19 + $0x90] sm:$0xff]  ;;  %s1032_s9 = scalar_lea.hbm %s1031_s8, 256  ;;  %p1037_p1 = scmp.lt.s32.totalorder %s1031_s8, %s1374_s3 }
  0x18   : > { %469 = vmatpush.msra.mxu0 %v354_v1  ;;  %946 = vmatpush.msra.mxu1 %v354_v1  ;;  %v343_v6 = vld [vmem:[%s1192_s19 + $0xc0] sm:$0xff]  ;;  %v344_v10 = vld [vmem:[%s1192_s19 + $0xc8] sm:$0xff]  ;;  %v345_v14 = vld [vmem:[%s1192_s19 + $0xd0] sm:$0xff]  ;;  %p1033_p12 = scmp.ne.s32.totalorder %s1031_s8, %s1032_s9  ;;  %p1038_p2 = scmp.lt.s32.totalorder %s1036_s18, %s1032_s9 }
  0x19   : > { %950 = vmatpush.msra.mxu2 %v353_v2  ;;  %951 = vmatpush.msra.mxu3 %v353_v2  ;;  %v319_v7 = vld [vmem:[%s1192_s19] sm:$0xff]  ;;  %v320_v11 = vld [vmem:[%s1192_s19 + $0x8] sm:$0xff]  ;;  %v321_v15 = vld [vmem:[%s1192_s19 + $0x10] sm:$0xff] }
  0x1a   : > { %470 = vmatpush.msra.mxu0 %v353_v2  ;;  %949 = vmatpush.msra.mxu1 %v353_v2  ;;  %v327_v8 = vld [vmem:[%s1192_s19 + $0x40] sm:$0xff]  ;;  %v328_v12 = vld [vmem:[%s1192_s19 + $0x48] sm:$0xff]  ;;  %v329_v16 = vld [vmem:[%s1192_s19 + $0x50] sm:$0xff]  ;;  %p1034_p13 = pnand %p1033_p12, %p1158_p4  ;;  %p1039_p3 = por %p1038_p2, %p1037_p1 }
  0x1b   : > { %953 = vmatpush.msra.mxu2 %v352_v3  ;;  %954 = vmatpush.msra.mxu3 %v352_v3  ;;  %v338_v17 = vld [vmem:[%s1192_s19 + $0x98] sm:$0xff]  ;;  %v339_v21 = vld [vmem:[%s1192_s19 + $0xa0] sm:$0xff]  ;;  %v340_v25 = vld [vmem:[%s1192_s19 + $0xa8] sm:$0xff] }
  0x1c   : > { %471 = vmatpush.msra.mxu0 %v352_v3  ;;  %952 = vmatpush.msra.mxu1 %v352_v3  ;;  %v346_v18 = vld [vmem:[%s1192_s19 + $0xd8] sm:$0xff]  ;;  %v347_v22 = vld [vmem:[%s1192_s19 + $0xe0] sm:$0xff]  ;;  %v348_v26 = vld [vmem:[%s1192_s19 + $0xe8] sm:$0xff]  ;;  %p1035_p0 = pneg %p1034_p13 }
  0x1d   : > { %956 = vmatpush.msra.mxu2 %v351_v4  ;;  %957 = vmatpush.msra.mxu3 %v351_v4  ;;  %v322_v19 = vld [vmem:[%s1192_s19 + $0x18] sm:$0xff]  ;;  %v323_v23 = vld [vmem:[%s1192_s19 + $0x20] sm:$0xff]  ;;  %v324_v27 = vld [vmem:[%s1192_s19 + $0x28] sm:$0xff] }
  0x1e   : > { %921 = vmatmul.msk.f32.vlgmr.msra.gmra.mxu2 %vm356_vm1, %v335_v5  ;;  %929 = vmatmul.msk.f32.vlgmr.msra.gmra.mxu3 %vm356_vm1, %v343_v6  ;;  %v330_v20 = vld [vmem:[%s1192_s19 + $0x58] sm:$0xff]  ;;  %v331_v24 = vld [vmem:[%s1192_s19 + $0x60] sm:$0xff]  ;;  %v332_v28 = vld [vmem:[%s1192_s19 + $0x68] sm:$0xff]  ;;  %p1040_p5 = pnand %p1039_p3, %p1035_p0 }
  0x1f   : > { %472 = vmatpush.msra.mxu0 %v351_v4  ;;  %955 = vmatpush.msra.mxu1 %v351_v4  ;;  %v341_v29 = vld [vmem:[%s1192_s19 + $0xb0] sm:$0xff]  ;;  %v342_v33 = vld [vmem:[%s1192_s19 + $0xb8] sm:$0xff] }
  0x20   : > { %905 = vmatmul.msk.f32.vlgmr.msra.gmra.mxu0 %vm356_vm1, %v319_v7  ;;  %913 = vmatmul.msk.f32.vlgmr.msra.gmra.mxu1 %vm356_vm1, %v327_v8  ;;  %v349_v30 = vld [vmem:[%s1192_s19 + $0xf0] sm:$0xff]  ;;  %v350_v34 = vld [vmem:[%s1192_s19 + $0xf8] sm:$0xff] }
  0x21   : > { %v325_v31 = vld [vmem:[%s1192_s19 + $0x30] sm:$0xff]  ;;  %v326_v35 = vld [vmem:[%s1192_s19 + $0x38] sm:$0xff] }
  0x22   : > { %v333_v32 = vld [vmem:[%s1192_s19 + $0x70] sm:$0xff]  ;;  %v334_v36 = vld [vmem:[%s1192_s19 + $0x78] sm:$0xff] }
  0x26   : > { %922 = vmatmul.msk.f32.gmra.mxu2 %vm356_vm1, %v336_v9  ;;  %930 = vmatmul.msk.f32.gmra.mxu3 %vm356_vm1, %v344_v10 }
  0x28   : > { %906 = vmatmul.msk.f32.gmra.mxu0 %vm356_vm1, %v320_v11  ;;  %914 = vmatmul.msk.f32.gmra.mxu1 %vm356_vm1, %v328_v12 }
  0x2e   : > { %923 = vmatmul.msk.f32.gmra.mxu2 %vm356_vm1, %v337_v13  ;;  %931 = vmatmul.msk.f32.gmra.mxu3 %vm356_vm1, %v345_v14 }
  0x30   : > { %907 = vmatmul.msk.f32.gmra.mxu0 %vm356_vm1, %v321_v15  ;;  %915 = vmatmul.msk.f32.gmra.mxu1 %vm356_vm1, %v329_v16 }
  0x36   : > { %924 = vmatmul.msk.f32.gmra.mxu2 %vm356_vm1, %v338_v17  ;;  %932 = vmatmul.msk.f32.gmra.mxu3 %vm356_vm1, %v346_v18 }
  0x38   : > { %908 = vmatmul.msk.f32.gmra.mxu0 %vm356_vm1, %v322_v19  ;;  %916 = vmatmul.msk.f32.gmra.mxu1 %vm356_vm1, %v330_v20 }
  0x3e   : > { %925 = vmatmul.msk.f32.gmra.mxu2 %vm356_vm1, %v339_v21  ;;  %933 = vmatmul.msk.f32.gmra.mxu3 %vm356_vm1, %v347_v22 }
  0x40   : > { %909 = vmatmul.msk.f32.gmra.mxu0 %vm356_vm1, %v323_v23  ;;  %917 = vmatmul.msk.f32.gmra.mxu1 %vm356_vm1, %v331_v24 }
  0x46   : > { %926 = vmatmul.msk.f32.gmra.mxu2 %vm356_vm1, %v340_v25  ;;  %934 = vmatmul.msk.f32.gmra.mxu3 %vm356_vm1, %v348_v26 }
  0x48   : > { %910 = vmatmul.msk.f32.gmra.mxu0 %vm356_vm1, %v324_v27  ;;  %918 = vmatmul.msk.f32.gmra.mxu1 %vm356_vm1, %v332_v28 }
  0x4e   : > { %927 = vmatmul.msk.f32.gmra.mxu2 %vm356_vm1, %v341_v29  ;;  %935 = vmatmul.msk.f32.gmra.mxu3 %vm356_vm1, %v349_v30 }
  0x50   : > { %911 = vmatmul.msk.f32.gmra.mxu0 %vm356_vm1, %v325_v31  ;;  %919 = vmatmul.msk.f32.gmra.mxu1 %vm356_vm1, %v333_v32 }
  0x56   : > { %928 = vmatmul.msk.f32.gmra.mxu2 %vm356_vm1, %v342_v33  ;;  %936 = vmatmul.msk.f32.gmra.mxu3 %vm356_vm1, %v350_v34 }
  0x58   : > { %912 = vmatmul.msk.f32.gmra.mxu0 %vm356_vm1, %v326_v35  ;;  %920 = vmatmul.msk.f32.gmra.mxu1 %vm356_vm1, %v334_v36 }
  0x9d   : > { %v474_v38 = vpop.f32.mrf.mxu0  ;;  %v498_v39 = vpop.f32.mrf.mxu1 }
  0x9e   : > { %v673_v40 = vadd.f32 %v1262_v37, %v474_v38  ;;  %v681_v41 = vadd.f32 %v1262_v37, %v498_v39 }
  0xa0   : > { %v705_v42 = vmax.f32 %v673_v40, 0.0  ;;  %v713_v43 = vmax.f32 %v681_v41, 0.0 }
  0xa1   : > { %v522_v44 = vpop.f32.mrf.mxu2  ;;  %v546_v45 = vpop.f32.mrf.mxu3 }
  0xa2   : > { %737 = vst [vmem:[%s1268_s28] sm:$0xff] %v705_v42  ;;  %v689_v46 = vadd.f32 %v1262_v37, %v522_v44  ;;  %v697_v47 = vadd.f32 %v1262_v37, %v546_v45 }
  0xa3   : > { %745 = vst [vmem:[%s1268_s28 + $0x40] sm:$0xff] %v713_v43 }
  0xa4   : > { %v721_v48 = vmax.f32 %v689_v46, 0.0  ;;  %v729_v49 = vmax.f32 %v697_v47, 0.0 }
  0xa5   : > { %v477_v50 = vpop.f32.mrf.mxu0  ;;  %v501_v51 = vpop.f32.mrf.mxu1 }
  0xa6   : > { %753 = vst [vmem:[%s1268_s28 + $0x80] sm:$0xff] %v721_v48  ;;  %v674_v52 = vadd.f32 %v1262_v37, %v477_v50  ;;  %v682_v53 = vadd.f32 %v1262_v37, %v501_v51 }
  0xa7   : > { %761 = vst [vmem:[%s1268_s28 + $0xc0] sm:$0xff] %v729_v49 }
  0xa8   : > { %v706_v54 = vmax.f32 %v674_v52, 0.0  ;;  %v714_v55 = vmax.f32 %v682_v53, 0.0 }
  0xa9   : > { %v525_v56 = vpop.f32.mrf.mxu2  ;;  %v549_v57 = vpop.f32.mrf.mxu3 }
  0xaa   : > { %738 = vst [vmem:[%s1268_s28 + $0x8] sm:$0xff] %v706_v54  ;;  %v690_v58 = vadd.f32 %v1262_v37, %v525_v56  ;;  %v698_v59 = vadd.f32 %v1262_v37, %v549_v57 }
  0xab   : > { %746 = vst [vmem:[%s1268_s28 + $0x48] sm:$0xff] %v714_v55 }
  0xac   : > { %v722_v60 = vmax.f32 %v690_v58, 0.0  ;;  %v730_v61 = vmax.f32 %v698_v59, 0.0 }
  0xad   : > { %v480_v62 = vpop.f32.mrf.mxu0  ;;  %v504_v63 = vpop.f32.mrf.mxu1 }
  0xae   : > { %754 = vst [vmem:[%s1268_s28 + $0x88] sm:$0xff] %v722_v60  ;;  %v675_v0 = vadd.f32 %v1262_v37, %v480_v62  ;;  %v683_v1 = vadd.f32 %v1262_v37, %v504_v63 }
  0xaf   : > { %762 = vst [vmem:[%s1268_s28 + $0xc8] sm:$0xff] %v730_v61 }
  0xb0   : > { %v707_v2 = vmax.f32 %v675_v0, 0.0  ;;  %v715_v3 = vmax.f32 %v683_v1, 0.0 }
  0xb1   : > { %v528_v4 = vpop.f32.mrf.mxu2  ;;  %v552_v5 = vpop.f32.mrf.mxu3 }
  0xb2   : > { %739 = vst [vmem:[%s1268_s28 + $0x10] sm:$0xff] %v707_v2  ;;  %v691_v6 = vadd.f32 %v1262_v37, %v528_v4  ;;  %v699_v7 = vadd.f32 %v1262_v37, %v552_v5 }
  0xb3   : > { %747 = vst [vmem:[%s1268_s28 + $0x50] sm:$0xff] %v715_v3 }
  0xb4   : > { %v723_v8 = vmax.f32 %v691_v6, 0.0  ;;  %v731_v9 = vmax.f32 %v699_v7, 0.0 }
  0xb5   : > { %v483_v10 = vpop.f32.mrf.mxu0  ;;  %v507_v11 = vpop.f32.mrf.mxu1 }
  0xb6   : > { %755 = vst [vmem:[%s1268_s28 + $0x90] sm:$0xff] %v723_v8  ;;  %v676_v12 = vadd.f32 %v1262_v37, %v483_v10  ;;  %v684_v13 = vadd.f32 %v1262_v37, %v507_v11 }
  0xb7   : > { %763 = vst [vmem:[%s1268_s28 + $0xd0] sm:$0xff] %v731_v9 }
  0xb8   : > { %v708_v14 = vmax.f32 %v676_v12, 0.0  ;;  %v716_v15 = vmax.f32 %v684_v13, 0.0 }
  0xb9   : > { %v531_v16 = vpop.f32.mrf.mxu2  ;;  %v555_v17 = vpop.f32.mrf.mxu3 }
  0xba   : > { %740 = vst [vmem:[%s1268_s28 + $0x18] sm:$0xff] %v708_v14  ;;  %v692_v18 = vadd.f32 %v1262_v37, %v531_v16  ;;  %v700_v19 = vadd.f32 %v1262_v37, %v555_v17 }
  0xbb   : > { %748 = vst [vmem:[%s1268_s28 + $0x58] sm:$0xff] %v716_v15 }
  0xbc   : > { %v724_v20 = vmax.f32 %v692_v18, 0.0  ;;  %v732_v21 = vmax.f32 %v700_v19, 0.0 }
  0xbd   : > { %v486_v22 = vpop.f32.mrf.mxu0  ;;  %v510_v23 = vpop.f32.mrf.mxu1 }
  0xbe   : > { %756 = vst [vmem:[%s1268_s28 + $0x98] sm:$0xff] %v724_v20  ;;  %v677_v24 = vadd.f32 %v1262_v37, %v486_v22  ;;  %v685_v25 = vadd.f32 %v1262_v37, %v510_v23 }
  0xbf   : > { %764 = vst [vmem:[%s1268_s28 + $0xd8] sm:$0xff] %v732_v21 }
  0xc0   : > { %v709_v26 = vmax.f32 %v677_v24, 0.0  ;;  %v717_v27 = vmax.f32 %v685_v25, 0.0 }
  0xc1   : > { %v534_v28 = vpop.f32.mrf.mxu2  ;;  %v558_v29 = vpop.f32.mrf.mxu3 }
  0xc2   : > { %741 = vst [vmem:[%s1268_s28 + $0x20] sm:$0xff] %v709_v26  ;;  %v693_v30 = vadd.f32 %v1262_v37, %v534_v28  ;;  %v701_v31 = vadd.f32 %v1262_v37, %v558_v29 }
  0xc3   : > { %749 = vst [vmem:[%s1268_s28 + $0x60] sm:$0xff] %v717_v27 }
  0xc4   : > { %v725_v32 = vmax.f32 %v693_v30, 0.0  ;;  %v733_v33 = vmax.f32 %v701_v31, 0.0 }
  0xc5   : > { %v489_v34 = vpop.f32.mrf.mxu0  ;;  %v513_v35 = vpop.f32.mrf.mxu1 }
  0xc6   : > { %757 = vst [vmem:[%s1268_s28 + $0xa0] sm:$0xff] %v725_v32  ;;  %v678_v36 = vadd.f32 %v1262_v37, %v489_v34  ;;  %v686_v38 = vadd.f32 %v1262_v37, %v513_v35 }
  0xc7   : > { %765 = vst [vmem:[%s1268_s28 + $0xe0] sm:$0xff] %v733_v33 }
  0xc8   : > { %v710_v39 = vmax.f32 %v678_v36, 0.0  ;;  %v718_v40 = vmax.f32 %v686_v38, 0.0 }
  0xc9   : > { %v537_v41 = vpop.f32.mrf.mxu2  ;;  %v561_v42 = vpop.f32.mrf.mxu3 }
  0xca   : > { %742 = vst [vmem:[%s1268_s28 + $0x28] sm:$0xff] %v710_v39  ;;  %v694_v43 = vadd.f32 %v1262_v37, %v537_v41  ;;  %v702_v44 = vadd.f32 %v1262_v37, %v561_v42 }
  0xcb   : > { %750 = vst [vmem:[%s1268_s28 + $0x68] sm:$0xff] %v718_v40 }
  0xcc   : > { %v726_v45 = vmax.f32 %v694_v43, 0.0  ;;  %v734_v46 = vmax.f32 %v702_v44, 0.0 }
  0xcd   : > { %v492_v47 = vpop.f32.mrf.mxu0  ;;  %v516_v48 = vpop.f32.mrf.mxu1 }
  0xce   : > { %758 = vst [vmem:[%s1268_s28 + $0xa8] sm:$0xff] %v726_v45  ;;  %v679_v49 = vadd.f32 %v1262_v37, %v492_v47  ;;  %v687_v50 = vadd.f32 %v1262_v37, %v516_v48 }
  0xcf   : > { %766 = vst [vmem:[%s1268_s28 + $0xe8] sm:$0xff] %v734_v46 }
  0xd0   : > { %v711_v51 = vmax.f32 %v679_v49, 0.0  ;;  %v719_v52 = vmax.f32 %v687_v50, 0.0 }
  0xd1   : > { %v540_v53 = vpop.f32.mrf.mxu2  ;;  %v564_v54 = vpop.f32.mrf.mxu3 }
  0xd2   : > { %743 = vst [vmem:[%s1268_s28 + $0x30] sm:$0xff] %v711_v51  ;;  %v695_v55 = vadd.f32 %v1262_v37, %v540_v53  ;;  %v703_v56 = vadd.f32 %v1262_v37, %v564_v54 }
  0xd3   : > { %751 = vst [vmem:[%s1268_s28 + $0x70] sm:$0xff] %v719_v52 }
  0xd4   : > { %v727_v57 = vmax.f32 %v695_v55, 0.0  ;;  %v735_v58 = vmax.f32 %v703_v56, 0.0 }
  0xd5   : > { %v495_v59 = vpop.f32.mrf.mxu0  ;;  %v519_v60 = vpop.f32.mrf.mxu1 }
  0xd6   : > { %759 = vst [vmem:[%s1268_s28 + $0xb0] sm:$0xff] %v727_v57  ;;  %v680_v61 = vadd.f32 %v1262_v37, %v495_v59  ;;  %v688_v62 = vadd.f32 %v1262_v37, %v519_v60 }
  0xd7   : > { %767 = vst [vmem:[%s1268_s28 + $0xf0] sm:$0xff] %v735_v58 }
  0xd8   : > { %v712_v63 = vmax.f32 %v680_v61, 0.0  ;;  %v720_v0 = vmax.f32 %v688_v62, 0.0 }
  0xd9   : > { %v543_v1 = vpop.f32.mrf.mxu2  ;;  %v567_v2 = vpop.f32.mrf.mxu3 }
  0xda   : > { %744 = vst [vmem:[%s1268_s28 + $0x38] sm:$0xff] %v712_v63  ;;  %v696_v3 = vadd.f32 %v1262_v37, %v543_v1  ;;  %v704_v4 = vadd.f32 %v1262_v37, %v567_v2 }
  0xdb   : > { %752 = vst [vmem:[%s1268_s28 + $0x78] sm:$0xff] %v720_v0 }
  0xdc   : > { %v728_v5 = vmax.f32 %v696_v3, 0.0  ;;  %v736_v6 = vmax.f32 %v704_v4, 0.0 }
  0xde   : > { %760 = vst [vmem:[%s1268_s28 + $0xb8] sm:$0xff] %v728_v5 }
  0xdf   : > { %768 = vst [vmem:[%s1268_s28 + $0xf8] sm:$0xff] %v736_v6 }
  0xe0   : > { %1043 = shalt.err (!%p1040_p5)
}
  0xe1   : > { %s1096_s21 = smov 128   ;;  %s1097_s26 = smov 8  }
  0xe2   : > { %958 = dma.vmem_to_hbm [thread:$0]  (%p1158_p4), %s784_s15, 4096, %s786_s6, %s770_s7, %s1096_s21, %s1096_s21, %s1097_s26  }
  0xe3 PF: > { %p964_p6 = scmp.ge.s32.totalorder %s1094_s17, 2  ;;  %s800_s27 = sand.u32 1, %s1074_s12  }
  0xe4   : > { %s801_s28 = scalar_lea.sflag [#allocation4], %s800_s27 }
  0xe5   : > { %p961_p7 = pnand %p964_p6, %p1165_p8 }
  0xe7   : > { %p962_p9 = pneg %p961_p7 }
  0xe9   : > { %1069 = dma.done.wait (%p962_p9), %s801_s28, 4096  }
  0xea   : > { %1071 = vsyncadd (%p962_p9), %s801_s28, 4294963200  ;;  %s16_s17 = sadd.s32 1, %s1094_s17   ;;  %s1377_s12 = smov %s1078_s13 }
  0xeb   : > { %p13_p10 = scmp.ge.s32.totalorder %s16_s17, 4   ;;  %s1378_s13 = smov %s1082_s14 }
  0xec   : > { %s1379_s14 = smov %s1171_s25  ;;  %s1380_s15 = smov %s1090_s16 }
  0xed   : > { %s1381_s16 = smov %s1383_s20  ;;  %15 = sbr.rel (!%p13_p10) target bundleno = 4 (0x4), region = 81 }
  0xf2   :  { %807 = vsyncpa [#allocation4], 1 }
  0xf3   :  { %809 = vsyncpa [#allocation4 + $0x1], 1 }

</bundles_post_ra>
